<compile_context>
chip_gen: v5e
topology: v5e:2x2
jax: 0.10.0
libtpu: 0.0.40
codegen_flags: <defaults>
</compile_context>

<pallas_src>
import functools
import math

import jax
import jax.numpy as jnp
from jax import lax
from jax.experimental import pallas as pl
from jax.experimental.pallas import tpu as pltpu


def _layer_norm(x, gamma, beta, eps=1e-5):
    # LayerNorm over the last dim (nn.LayerNorm(d_model) defaults), f32 statistics.
    mean = jnp.mean(x, axis=-1, keepdims=True)
    var = jnp.mean((x - mean) ** 2, axis=-1, keepdims=True)
    inv = lax.rsqrt(var + eps)
    return (x - mean) * inv * gamma + beta


def encoder_layer_kernel(
    x_ref,
    wqkv_ref, bqkv_ref, wo_ref, bo_ref,
    w1_ref, b1_ref, w2_ref, b2_ref,
    g1_ref, be1_ref, g2_ref, be2_ref,
    o_ref,
    qkv_scr, hout_scr,
    *, num_heads,
):
    bf16 = jnp.bfloat16
    x = x_ref[...]                               # (S, D) f32 (batch dim squeezed)
    seq, d_model = x.shape
    dh = d_model // num_heads

    # ---------- sublayer 1: x + MHA(LayerNorm(x)) ----------
    xn = _layer_norm(x, g1_ref[...], be1_ref[...])            # f32 statistics

    # Fused QKV projection: one (S, D) @ (D, 3D) MXU pass, bf16 operands, f32 acc.
    # The 1/sqrt(dh) attention scale is pre-folded into the Q columns of wqkv/bqkv.
    qkv = jnp.dot(xn.astype(bf16), wqkv_ref[...],
                  preferred_element_type=jnp.float32) + bqkv_ref[...]
    qkv_scr[...] = qkv.astype(bf16)              # bf16 staging for per-head views

    # Per-head attention. Static slices of the scratch refs are zero-cost views
    # and every head's result is immediately stored to hout_scr, so no large
    # value is carried across loop iterations (bounded live ranges).
    for h in range(num_heads):                   # H is small & static
        lo = h * dh
        qh = qkv_scr[:, lo:lo + dh]                                    # (S, dh) bf16, pre-scaled
        kh = qkv_scr[:, d_model + lo:d_model + lo + dh]                # (S, dh) bf16
        vh = qkv_scr[:, 2 * d_model + lo:2 * d_model + lo + dh]        # (S, dh) bf16

        # Q K^T with the transpose folded into dot_general (contract dh of both).
        s = lax.dot_general(qh, kh, (((1,), (1,)), ((), ())),
                            preferred_element_type=jnp.float32)        # (S, S) f32

        # Softmax with deferred normalization: normalize the (S, dh) head output
        # instead of the (S, S) probability matrix; e <= 1 so bf16 cast is safe.
        m = jnp.max(s, axis=-1, keepdims=True)
        e = jnp.exp(s - m)
        denom = jnp.sum(e, axis=-1, keepdims=True)
        oh = jnp.dot(e.astype(bf16), vh, preferred_element_type=jnp.float32)
        oh = oh * pl.reciprocal(denom, approx=True)                    # EUP slot
        hout_scr[:, lo:lo + dh] = oh.astype(bf16)

    # Single full-width output projection: (S, D) @ (D, D), K = D (not dh).
    attn = jnp.dot(hout_scr[...], wo_ref[...], preferred_element_type=jnp.float32)
    x1 = x + attn + bo_ref[...]                  # dropout == identity (eval)

    # ---------- sublayer 2: x1 + FFN(LayerNorm(x1)) ----------
    xn2 = _layer_norm(x1, g2_ref[...], be2_ref[...])
    h1 = jnp.dot(xn2.astype(bf16), w1_ref[...],
                 preferred_element_type=jnp.float32) + b1_ref[...]
    h1 = jnp.maximum(h1, 0.0).astype(bf16)       # bf16 (S, HS) intermediate
    ffn = jnp.dot(h1, w2_ref[...], preferred_element_type=jnp.float32) + b2_ref[...]

    o_ref[...] = x1 + ffn


def prepare_params(params, *, num_heads):
    """One-time weight layout / cast prep (hoisted out of the per-call path).

    Folds the 1/sqrt(d_head) attention scale into the Q columns of the fused
    QKV weight/bias and casts matmul weights to bf16.
    """
    d_model = params["wq"].shape[0]
    dh = d_model // num_heads
    scale = 1.0 / math.sqrt(dh)
    bf16 = jnp.bfloat16
    wqkv = jnp.concatenate(
        [params["wq"] * scale, params["wk"], params["wv"]], axis=1).astype(bf16)
    bqkv = jnp.concatenate(
        [params["bq"] * scale, params["bk"], params["bv"]], axis=1)       # (1, 3D) f32
    return {
        "wqkv": wqkv, "bqkv": bqkv,
        "wo": params["wo"].astype(bf16), "bo": params["bo"],
        "w1": params["w1"].astype(bf16), "b1": params["b1"],
        "w2": params["w2"].astype(bf16), "b2": params["b2"],
        "g1": params["g1"], "be1": params["be1"],
        "g2": params["g2"], "be2": params["be2"],
    }


def _vmem_limit_bytes(S, D, HS):
    """Footprint-based scoped-VMEM request, clamped to ~3/4 of physical VMEM."""
    bf, f32 = 2, 4
    weights = (3 * D * D + D * D + 2 * D * HS) * bf + (3 * D + D + HS + D + 4 * D) * f32
    io = 2 * 2 * S * D * f32                       # x / out blocks, double-buffered
    scratch = S * 3 * D * bf + S * D * bf
    live = (S * S + S * HS + 6 * S * D) * f32      # scores, FFN temp, misc temporaries
    est = weights + io + scratch + live + (4 << 20)
    try:
        phys = pltpu.get_tpu_info().vmem_capacity_bytes
    except Exception:                              # pragma: no cover - defensive
        phys = 64 << 20
    cap = (phys * 3) // 4                          # ~96 MiB on v5e/v6e, ~48 MiB on v7x
    return int(max(32 << 20, min(est, cap)))


def encoder_layer(x, prepared, *, num_heads):
    """x: (B, S, D) float32.  prepared: output of prepare_params()."""
    B, S, D = x.shape
    HS = prepared["w1"].shape[1]

    weight_operands = (
        prepared["wqkv"], prepared["bqkv"],
        prepared["wo"], prepared["bo"],
        prepared["w1"], prepared["b1"],
        prepared["w2"], prepared["b2"],
        prepared["g1"], prepared["be1"],
        prepared["g2"], prepared["be2"],
    )

    def w_spec(shape):
        # Grid-invariant weight block (same block every grid step).
        return pl.BlockSpec(shape, lambda b: (0,) * len(shape))

    x_spec = pl.BlockSpec((pl.Squeezed(), S, D), lambda b: (b, 0, 0))
    in_specs = [x_spec] + [w_spec(w.shape) for w in weight_operands]
    out_spec = pl.BlockSpec((pl.Squeezed(), S, D), lambda b: (b, 0, 0))

    kernel = functools.partial(encoder_layer_kernel, num_heads=num_heads)
    return pl.pallas_call(
        kernel,
        out_shape=jax.ShapeDtypeStruct((B, S, D), jnp.float32),
        grid_spec=pltpu.PrefetchScalarGridSpec(
            num_scalar_prefetch=0,
            grid=(B,),
            in_specs=in_specs,
            out_specs=out_spec,
            scratch_shapes=[
                pltpu.VMEM((S, 3 * D), jnp.bfloat16),   # fused QKV staging
                pltpu.VMEM((S, D), jnp.bfloat16),       # concatenated head outputs
            ],
        ),
        compiler_params=pltpu.CompilerParams(
            dimension_semantics=("parallel",),          # batch items independent (2 TCs on v7x)
            vmem_limit_bytes=_vmem_limit_bytes(S, D, HS),
        ),
    )(x, *weight_operands)


def init_params(key, d_model, num_heads, hidden_size):
    ks = jax.random.split(key, 6)
    std = 0.02
    return {
        "wq": jax.random.normal(ks[0], (d_model, d_model), jnp.float32) * std,
        "wk": jax.random.normal(ks[1], (d_model, d_model), jnp.float32) * std,
        "wv": jax.random.normal(ks[2], (d_model, d_model), jnp.float32) * std,
        "wo": jax.random.normal(ks[3], (d_model, d_model), jnp.float32) * std,
        "w1": jax.random.normal(ks[4], (d_model, hidden_size), jnp.float32) * std,
        "w2": jax.random.normal(ks[5], (hidden_size, d_model), jnp.float32) * std,
        "bq": jnp.zeros((1, d_model), jnp.float32),
        "bk": jnp.zeros((1, d_model), jnp.float32),
        "bv": jnp.zeros((1, d_model), jnp.float32),
        "bo": jnp.zeros((1, d_model), jnp.float32),
        "b1": jnp.zeros((1, hidden_size), jnp.float32),
        "b2": jnp.zeros((1, d_model), jnp.float32),
        "g1": jnp.ones((1, d_model), jnp.float32),
        "be1": jnp.zeros((1, d_model), jnp.float32),
        "g2": jnp.ones((1, d_model), jnp.float32),
        "be2": jnp.zeros((1, d_model), jnp.float32),
    }


def reference_encoder_layer(x, p, *, num_heads):
    """Pure-JAX (f32) reference of the same forward pass."""
    def ln(z, g, b, eps=1e-5):
        m = jnp.mean(z, axis=-1, keepdims=True)
        v = jnp.mean((z - m) ** 2, axis=-1, keepdims=True)
        return (z - m) / jnp.sqrt(v + eps) * g + b

    B, S, D = x.shape
    dh = D // num_heads

    xn = ln(x, p["g1"][0], p["be1"][0])
    q = xn @ p["wq"] + p["bq"][0]
    k = xn @ p["wk"] + p["bk"][0]
    v = xn @ p["wv"] + p["bv"][0]
    q = q.reshape(B, S, num_heads, dh).transpose(0, 2, 1, 3)
    k = k.reshape(B, S, num_heads, dh).transpose(0, 2, 1, 3)
    v = v.reshape(B, S, num_heads, dh).transpose(0, 2, 1, 3)
    s = jnp.einsum("bhqd,bhkd->bhqk", q, k) / jnp.sqrt(dh)
    pattn = jax.nn.softmax(s, axis=-1)
    o = jnp.einsum("bhqk,bhkd->bhqd", pattn, v).transpose(0, 2, 1, 3).reshape(B, S, D)
    x1 = x + (o @ p["wo"] + p["bo"][0])

    xn2 = ln(x1, p["g2"][0], p["be2"][0])
    ffn = jnp.maximum(xn2 @ p["w1"] + p["b1"][0], 0.0) @ p["w2"] + p["b2"][0]
    return x1 + ffn


if __name__ == "__main__":
    d_model, num_heads, hidden_size = 32, 4, 64
    B, S = 2, 8

    key = jax.random.PRNGKey(0)
    k_x, k_p = jax.random.split(key)
    x = jax.random.normal(k_x, (B, S, d_model), jnp.float32)
    params = init_params(k_p, d_model, num_heads, hidden_size)

    prepared = prepare_params(params, num_heads=num_heads)   # one-time layout prep
    out = jax.block_until_ready(encoder_layer(x, prepared, num_heads=num_heads))

    ref = reference_encoder_layer(x, params, num_heads=num_heads)
    assert out.shape == (B, S, d_model)
    # bf16 MXU operands + approx reciprocal -> loosen tolerance vs the f32 reference.
    assert jnp.allclose(out, ref, rtol=2e-2, atol=2e-2), "mismatch vs pure-JAX reference"

    print("KERNEL_OK")
</pallas_src>

<mosaic_0001>
module attributes {stable_mosaic.version = 11 : i64} {
  func.func @encoder_layer_kernel(%arg0: i32, %arg1: memref<1x8x32xf32, #tpu.memory_space<vmem>>, %arg2: memref<32x96xbf16, #tpu.memory_space<vmem>>, %arg3: memref<1x96xf32, #tpu.memory_space<vmem>>, %arg4: memref<32x32xbf16, #tpu.memory_space<vmem>>, %arg5: memref<1x32xf32, #tpu.memory_space<vmem>>, %arg6: memref<32x64xbf16, #tpu.memory_space<vmem>>, %arg7: memref<1x64xf32, #tpu.memory_space<vmem>>, %arg8: memref<64x32xbf16, #tpu.memory_space<vmem>>, %arg9: memref<1x32xf32, #tpu.memory_space<vmem>>, %arg10: memref<1x32xf32, #tpu.memory_space<vmem>>, %arg11: memref<1x32xf32, #tpu.memory_space<vmem>>, %arg12: memref<1x32xf32, #tpu.memory_space<vmem>>, %arg13: memref<1x32xf32, #tpu.memory_space<vmem>>, %arg14: memref<1x8x32xf32, #tpu.memory_space<vmem>>, %arg15: memref<8x96xbf16, #tpu.memory_space<vmem>>, %arg16: memref<8x32xbf16, #tpu.memory_space<vmem>>) attributes {dimension_semantics = [#tpu.dimension_semantics<parallel>], iteration_bounds = array<i64: 2>, scalar_prefetch = 0 : i64, scratch_operands = 2 : i64, tpu.core_type = #tpu.core_type<tc>, window_params = [{transform_indices = @transform_0, window_bounds = array<i64: 1, 8, 32>}, {pipeline_mode = #tpu.pipeline_mode<synchronous>, transform_indices = @transform_1, window_bounds = array<i64: 32, 96>}, {pipeline_mode = #tpu.pipeline_mode<synchronous>, transform_indices = @transform_2, window_bounds = array<i64: 1, 96>}, {pipeline_mode = #tpu.pipeline_mode<synchronous>, transform_indices = @transform_3, window_bounds = array<i64: 32, 32>}, {pipeline_mode = #tpu.pipeline_mode<synchronous>, transform_indices = @transform_4, window_bounds = array<i64: 1, 32>}, {pipeline_mode = #tpu.pipeline_mode<synchronous>, transform_indices = @transform_5, window_bounds = array<i64: 32, 64>}, {pipeline_mode = #tpu.pipeline_mode<synchronous>, transform_indices = @transform_6, window_bounds = array<i64: 1, 64>}, {pipeline_mode = #tpu.pipeline_mode<synchronous>, transform_indices = @transform_7, window_bounds = array<i64: 64, 32>}, {pipeline_mode = #tpu.pipeline_mode<synchronous>, transform_indices = @transform_8, window_bounds = array<i64: 1, 32>}, {pipeline_mode = #tpu.pipeline_mode<synchronous>, transform_indices = @transform_9, window_bounds = array<i64: 1, 32>}, {pipeline_mode = #tpu.pipeline_mode<synchronous>, transform_indices = @transform_10, window_bounds = array<i64: 1, 32>}, {pipeline_mode = #tpu.pipeline_mode<synchronous>, transform_indices = @transform_11, window_bounds = array<i64: 1, 32>}, {pipeline_mode = #tpu.pipeline_mode<synchronous>, transform_indices = @transform_12, window_bounds = array<i64: 1, 32>}, {transform_indices = @transform_13, window_bounds = array<i64: 1, 8, 32>}]} {
    %c0 = arith.constant 0 : index
    %c0_0 = arith.constant 0 : index
    %c0_1 = arith.constant 0 : index
    %0 = vector.load %arg1[%c0, %c0_0, %c0_1] : memref<1x8x32xf32, #tpu.memory_space<vmem>>, vector<1x8x32xf32>
    %1 = vector.shape_cast %0 : vector<1x8x32xf32> to vector<8x32xf32>
    %c0_2 = arith.constant 0 : index
    %c0_3 = arith.constant 0 : index
    %2 = vector.load %arg10[%c0_2, %c0_3] : memref<1x32xf32, #tpu.memory_space<vmem>>, vector<1x32xf32>
    %c0_4 = arith.constant 0 : index
    %c0_5 = arith.constant 0 : index
    %3 = vector.load %arg11[%c0_4, %c0_5] : memref<1x32xf32, #tpu.memory_space<vmem>>, vector<1x32xf32>
    %cst = arith.constant dense<0.000000e+00> : vector<8xf32>
    %4 = vector.multi_reduction <add>, %1, %cst [1] : vector<8x32xf32> to vector<8xf32>
    %5 = vector.shape_cast %4 : vector<8xf32> to vector<8x1xf32>
    %cst_6 = arith.constant 3.200000e+01 : f32
    %6 = vector.broadcast %cst_6 : f32 to vector<8x1xf32>
    %7 = arith.divf %5, %6 : vector<8x1xf32>
    %8 = vector.broadcast %7 : vector<8x1xf32> to vector<8x32xf32>
    %9 = arith.subf %1, %8 : vector<8x32xf32>
    %10 = arith.mulf %9, %9 : vector<8x32xf32>
    %cst_7 = arith.constant dense<0.000000e+00> : vector<8xf32>
    %11 = vector.multi_reduction <add>, %10, %cst_7 [1] : vector<8x32xf32> to vector<8xf32>
    %12 = vector.shape_cast %11 : vector<8xf32> to vector<8x1xf32>
    %cst_8 = arith.constant 3.200000e+01 : f32
    %13 = vector.broadcast %cst_8 : f32 to vector<8x1xf32>
    %14 = arith.divf %12, %13 : vector<8x1xf32>
    %cst_9 = arith.constant 9.99999974E-6 : f32
    %15 = vector.broadcast %cst_9 : f32 to vector<8x1xf32>
    %16 = arith.addf %14, %15 : vector<8x1xf32>
    %17 = math.rsqrt %16 : vector<8x1xf32>
    %18 = vector.broadcast %7 : vector<8x1xf32> to vector<8x32xf32>
    %19 = arith.subf %1, %18 : vector<8x32xf32>
    %20 = vector.broadcast %17 : vector<8x1xf32> to vector<8x32xf32>
    %21 = arith.mulf %19, %20 : vector<8x32xf32>
    %22 = vector.broadcast %2 : vector<1x32xf32> to vector<8x32xf32>
    %23 = arith.mulf %21, %22 : vector<8x32xf32>
    %24 = vector.broadcast %3 : vector<1x32xf32> to vector<8x32xf32>
    %25 = arith.addf %23, %24 : vector<8x32xf32>
    %26 = arith.truncf %25 : vector<8x32xf32> to vector<8x32xbf16>
    %c0_10 = arith.constant 0 : index
    %c0_11 = arith.constant 0 : index
    %27 = vector.load %arg2[%c0_10, %c0_11] : memref<32x96xbf16, #tpu.memory_space<vmem>>, vector<32x96xbf16>
    %cst_12 = arith.constant dense<0.000000e+00> : vector<8x96xf32>
    %28 = tpu.matmul %26, %27, %cst_12 {dimension_numbers = #tpu.dot_dimension_numbers<[1], [0], [0], [1], [0, 0, 1, 1], [], []>} : vector<8x32xbf16>, vector<32x96xbf16>, vector<8x96xf32> -> vector<8x96xf32>
    %c0_13 = arith.constant 0 : index
    %c0_14 = arith.constant 0 : index
    %29 = vector.load %arg3[%c0_13, %c0_14] : memref<1x96xf32, #tpu.memory_space<vmem>>, vector<1x96xf32>
    %30 = vector.broadcast %29 : vector<1x96xf32> to vector<8x96xf32>
    %31 = arith.addf %28, %30 : vector<8x96xf32>
    %32 = arith.truncf %31 : vector<8x96xf32> to vector<8x96xbf16>
    %c0_15 = arith.constant 0 : index
    %c0_16 = arith.constant 0 : index
    %33 = vector.load %arg15[%c0_15, %c0_16] : memref<8x96xbf16, #tpu.memory_space<vmem>>, vector<8x96xbf16>
    tpu.vector_store %arg15[%c0_15, %c0_16], %32 {strides = array<i32>} : memref<8x96xbf16, #tpu.memory_space<vmem>>, vector<8x96xbf16>,
    %c0_17 = arith.constant 0 : index
    %c0_18 = arith.constant 0 : index
    %34 = vector.load %arg15[%c0_17, %c0_18] : memref<8x96xbf16, #tpu.memory_space<vmem>>, vector<8x8xbf16>
    %c0_19 = arith.constant 0 : index
    %c32 = arith.constant 32 : index
    %35 = vector.load %arg15[%c0_19, %c32] : memref<8x96xbf16, #tpu.memory_space<vmem>>, vector<8x8xbf16>
    %c0_20 = arith.constant 0 : index
    %c64 = arith.constant 64 : index
    %36 = vector.load %arg15[%c0_20, %c64] : memref<8x96xbf16, #tpu.memory_space<vmem>>, vector<8x8xbf16>
    %cst_21 = arith.constant dense<0.000000e+00> : vector<8x8xf32>
    %37 = tpu.matmul %34, %35, %cst_21 {dimension_numbers = #tpu.dot_dimension_numbers<[1], [1], [0], [0], [0, 0, 1, 0], [], []>} : vector<8x8xbf16>, vector<8x8xbf16>, vector<8x8xf32> -> vector<8x8xf32>
    %cst_22 = arith.constant dense<0xFF800000> : vector<8xf32>
    %38 = vector.multi_reduction <maximumf>, %37, %cst_22 [1] : vector<8x8xf32> to vector<8xf32>
    %39 = vector.shape_cast %38 : vector<8xf32> to vector<8x1xf32>
    %40 = vector.broadcast %39 : vector<8x1xf32> to vector<8x8xf32>
    %41 = arith.subf %37, %40 : vector<8x8xf32>
    %42 = math.exp %41 : vector<8x8xf32>
    %cst_23 = arith.constant dense<0.000000e+00> : vector<8xf32>
    %43 = vector.multi_reduction <add>, %42, %cst_23 [1] : vector<8x8xf32> to vector<8xf32>
    %44 = vector.shape_cast %43 : vector<8xf32> to vector<8x1xf32>
    %45 = arith.truncf %42 : vector<8x8xf32> to vector<8x8xbf16>
    %cst_24 = arith.constant dense<0.000000e+00> : vector<8x8xf32>
    %46 = tpu.matmul %45, %36, %cst_24 {dimension_numbers = #tpu.dot_dimension_numbers<[1], [0], [0], [1], [0, 0, 1, 1], [], []>} : vector<8x8xbf16>, vector<8x8xbf16>, vector<8x8xf32> -> vector<8x8xf32>
    %47 = tpu.reciprocal %44 {approx = true} : vector<8x1xf32> -> vector<8x1xf32>
    %48 = vector.broadcast %47 : vector<8x1xf32> to vector<8x8xf32>
    %49 = arith.mulf %46, %48 : vector<8x8xf32>
    %50 = arith.truncf %49 : vector<8x8xf32> to vector<8x8xbf16>
    %c0_25 = arith.constant 0 : index
    %c0_26 = arith.constant 0 : index
    %51 = vector.load %arg16[%c0_25, %c0_26] : memref<8x32xbf16, #tpu.memory_space<vmem>>, vector<8x8xbf16>
    tpu.vector_store %arg16[%c0_25, %c0_26], %50 {strides = array<i32>} : memref<8x32xbf16, #tpu.memory_space<vmem>>, vector<8x8xbf16>,
    %c0_27 = arith.constant 0 : index
    %c8 = arith.constant 8 : index
    %52 = vector.load %arg15[%c0_27, %c8] : memref<8x96xbf16, #tpu.memory_space<vmem>>, vector<8x8xbf16>
    %c0_28 = arith.constant 0 : index
    %c40 = arith.constant 40 : index
    %53 = vector.load %arg15[%c0_28, %c40] : memref<8x96xbf16, #tpu.memory_space<vmem>>, vector<8x8xbf16>
    %c0_29 = arith.constant 0 : index
    %c72 = arith.constant 72 : index
    %54 = vector.load %arg15[%c0_29, %c72] : memref<8x96xbf16, #tpu.memory_space<vmem>>, vector<8x8xbf16>
    %cst_30 = arith.constant dense<0.000000e+00> : vector<8x8xf32>
    %55 = tpu.matmul %52, %53, %cst_30 {dimension_numbers = #tpu.dot_dimension_numbers<[1], [1], [0], [0], [0, 0, 1, 0], [], []>} : vector<8x8xbf16>, vector<8x8xbf16>, vector<8x8xf32> -> vector<8x8xf32>
    %cst_31 = arith.constant dense<0xFF800000> : vector<8xf32>
    %56 = vector.multi_reduction <maximumf>, %55, %cst_31 [1] : vector<8x8xf32> to vector<8xf32>
    %57 = vector.shape_cast %56 : vector<8xf32> to vector<8x1xf32>
    %58 = vector.broadcast %57 : vector<8x1xf32> to vector<8x8xf32>
    %59 = arith.subf %55, %58 : vector<8x8xf32>
    %60 = math.exp %59 : vector<8x8xf32>
    %cst_32 = arith.constant dense<0.000000e+00> : vector<8xf32>
    %61 = vector.multi_reduction <add>, %60, %cst_32 [1] : vector<8x8xf32> to vector<8xf32>
    %62 = vector.shape_cast %61 : vector<8xf32> to vector<8x1xf32>
    %63 = arith.truncf %60 : vector<8x8xf32> to vector<8x8xbf16>
    %cst_33 = arith.constant dense<0.000000e+00> : vector<8x8xf32>
    %64 = tpu.matmul %63, %54, %cst_33 {dimension_numbers = #tpu.dot_dimension_numbers<[1], [0], [0], [1], [0, 0, 1, 1], [], []>} : vector<8x8xbf16>, vector<8x8xbf16>, vector<8x8xf32> -> vector<8x8xf32>
    %65 = tpu.reciprocal %62 {approx = true} : vector<8x1xf32> -> vector<8x1xf32>
    %66 = vector.broadcast %65 : vector<8x1xf32> to vector<8x8xf32>
    %67 = arith.mulf %64, %66 : vector<8x8xf32>
    %68 = arith.truncf %67 : vector<8x8xf32> to vector<8x8xbf16>
    %c0_34 = arith.constant 0 : index
    %c8_35 = arith.constant 8 : index
    %69 = vector.load %arg16[%c0_34, %c8_35] : memref<8x32xbf16, #tpu.memory_space<vmem>>, vector<8x8xbf16>
    tpu.vector_store %arg16[%c0_34, %c8_35], %68 {strides = array<i32>} : memref<8x32xbf16, #tpu.memory_space<vmem>>, vector<8x8xbf16>,
    %c0_36 = arith.constant 0 : index
    %c16 = arith.constant 16 : index
    %70 = vector.load %arg15[%c0_36, %c16] : memref<8x96xbf16, #tpu.memory_space<vmem>>, vector<8x8xbf16>
    %c0_37 = arith.constant 0 : index
    %c48 = arith.constant 48 : index
    %71 = vector.load %arg15[%c0_37, %c48] : memref<8x96xbf16, #tpu.memory_space<vmem>>, vector<8x8xbf16>
    %c0_38 = arith.constant 0 : index
    %c80 = arith.constant 80 : index
    %72 = vector.load %arg15[%c0_38, %c80] : memref<8x96xbf16, #tpu.memory_space<vmem>>, vector<8x8xbf16>
    %cst_39 = arith.constant dense<0.000000e+00> : vector<8x8xf32>
    %73 = tpu.matmul %70, %71, %cst_39 {dimension_numbers = #tpu.dot_dimension_numbers<[1], [1], [0], [0], [0, 0, 1, 0], [], []>} : vector<8x8xbf16>, vector<8x8xbf16>, vector<8x8xf32> -> vector<8x8xf32>
    %cst_40 = arith.constant dense<0xFF800000> : vector<8xf32>
    %74 = vector.multi_reduction <maximumf>, %73, %cst_40 [1] : vector<8x8xf32> to vector<8xf32>
    %75 = vector.shape_cast %74 : vector<8xf32> to vector<8x1xf32>
    %76 = vector.broadcast %75 : vector<8x1xf32> to vector<8x8xf32>
    %77 = arith.subf %73, %76 : vector<8x8xf32>
    %78 = math.exp %77 : vector<8x8xf32>
    %cst_41 = arith.constant dense<0.000000e+00> : vector<8xf32>
    %79 = vector.multi_reduction <add>, %78, %cst_41 [1] : vector<8x8xf32> to vector<8xf32>
    %80 = vector.shape_cast %79 : vector<8xf32> to vector<8x1xf32>
    %81 = arith.truncf %78 : vector<8x8xf32> to vector<8x8xbf16>
    %cst_42 = arith.constant dense<0.000000e+00> : vector<8x8xf32>
    %82 = tpu.matmul %81, %72, %cst_42 {dimension_numbers = #tpu.dot_dimension_numbers<[1], [0], [0], [1], [0, 0, 1, 1], [], []>} : vector<8x8xbf16>, vector<8x8xbf16>, vector<8x8xf32> -> vector<8x8xf32>
    %83 = tpu.reciprocal %80 {approx = true} : vector<8x1xf32> -> vector<8x1xf32>
    %84 = vector.broadcast %83 : vector<8x1xf32> to vector<8x8xf32>
    %85 = arith.mulf %82, %84 : vector<8x8xf32>
    %86 = arith.truncf %85 : vector<8x8xf32> to vector<8x8xbf16>
    %c0_43 = arith.constant 0 : index
    %c16_44 = arith.constant 16 : index
    %87 = vector.load %arg16[%c0_43, %c16_44] : memref<8x32xbf16, #tpu.memory_space<vmem>>, vector<8x8xbf16>
    tpu.vector_store %arg16[%c0_43, %c16_44], %86 {strides = array<i32>} : memref<8x32xbf16, #tpu.memory_space<vmem>>, vector<8x8xbf16>,
    %c0_45 = arith.constant 0 : index
    %c24 = arith.constant 24 : index
    %88 = vector.load %arg15[%c0_45, %c24] : memref<8x96xbf16, #tpu.memory_space<vmem>>, vector<8x8xbf16>
    %c0_46 = arith.constant 0 : index
    %c56 = arith.constant 56 : index
    %89 = vector.load %arg15[%c0_46, %c56] : memref<8x96xbf16, #tpu.memory_space<vmem>>, vector<8x8xbf16>
    %c0_47 = arith.constant 0 : index
    %c88 = arith.constant 88 : index
    %90 = vector.load %arg15[%c0_47, %c88] : memref<8x96xbf16, #tpu.memory_space<vmem>>, vector<8x8xbf16>
    %cst_48 = arith.constant dense<0.000000e+00> : vector<8x8xf32>
    %91 = tpu.matmul %88, %89, %cst_48 {dimension_numbers = #tpu.dot_dimension_numbers<[1], [1], [0], [0], [0, 0, 1, 0], [], []>} : vector<8x8xbf16>, vector<8x8xbf16>, vector<8x8xf32> -> vector<8x8xf32>
    %cst_49 = arith.constant dense<0xFF800000> : vector<8xf32>
    %92 = vector.multi_reduction <maximumf>, %91, %cst_49 [1] : vector<8x8xf32> to vector<8xf32>
    %93 = vector.shape_cast %92 : vector<8xf32> to vector<8x1xf32>
    %94 = vector.broadcast %93 : vector<8x1xf32> to vector<8x8xf32>
    %95 = arith.subf %91, %94 : vector<8x8xf32>
    %96 = math.exp %95 : vector<8x8xf32>
    %cst_50 = arith.constant dense<0.000000e+00> : vector<8xf32>
    %97 = vector.multi_reduction <add>, %96, %cst_50 [1] : vector<8x8xf32> to vector<8xf32>
    %98 = vector.shape_cast %97 : vector<8xf32> to vector<8x1xf32>
    %99 = arith.truncf %96 : vector<8x8xf32> to vector<8x8xbf16>
    %cst_51 = arith.constant dense<0.000000e+00> : vector<8x8xf32>
    %100 = tpu.matmul %99, %90, %cst_51 {dimension_numbers = #tpu.dot_dimension_numbers<[1], [0], [0], [1], [0, 0, 1, 1], [], []>} : vector<8x8xbf16>, vector<8x8xbf16>, vector<8x8xf32> -> vector<8x8xf32>
    %101 = tpu.reciprocal %98 {approx = true} : vector<8x1xf32> -> vector<8x1xf32>
    %102 = vector.broadcast %101 : vector<8x1xf32> to vector<8x8xf32>
    %103 = arith.mulf %100, %102 : vector<8x8xf32>
    %104 = arith.truncf %103 : vector<8x8xf32> to vector<8x8xbf16>
    %c0_52 = arith.constant 0 : index
    %c24_53 = arith.constant 24 : index
    %105 = vector.load %arg16[%c0_52, %c24_53] : memref<8x32xbf16, #tpu.memory_space<vmem>>, vector<8x8xbf16>
    tpu.vector_store %arg16[%c0_52, %c24_53], %104 {strides = array<i32>} : memref<8x32xbf16, #tpu.memory_space<vmem>>, vector<8x8xbf16>,
    %c0_54 = arith.constant 0 : index
    %c0_55 = arith.constant 0 : index
    %106 = vector.load %arg16[%c0_54, %c0_55] : memref<8x32xbf16, #tpu.memory_space<vmem>>, vector<8x32xbf16>
    %c0_56 = arith.constant 0 : index
    %c0_57 = arith.constant 0 : index
    %107 = vector.load %arg4[%c0_56, %c0_57] : memref<32x32xbf16, #tpu.memory_space<vmem>>, vector<32x32xbf16>
    %cst_58 = arith.constant dense<0.000000e+00> : vector<8x32xf32>
    %108 = tpu.matmul %106, %107, %cst_58 {dimension_numbers = #tpu.dot_dimension_numbers<[1], [0], [0], [1], [0, 0, 1, 1], [], []>} : vector<8x32xbf16>, vector<32x32xbf16>, vector<8x32xf32> -> vector<8x32xf32>
    %109 = arith.addf %1, %108 : vector<8x32xf32>
    %c0_59 = arith.constant 0 : index
    %c0_60 = arith.constant 0 : index
    %110 = vector.load %arg5[%c0_59, %c0_60] : memref<1x32xf32, #tpu.memory_space<vmem>>, vector<1x32xf32>
    %111 = vector.broadcast %110 : vector<1x32xf32> to vector<8x32xf32>
    %112 = arith.addf %109, %111 : vector<8x32xf32>
    %c0_61 = arith.constant 0 : index
    %c0_62 = arith.constant 0 : index
    %113 = vector.load %arg12[%c0_61, %c0_62] : memref<1x32xf32, #tpu.memory_space<vmem>>, vector<1x32xf32>
    %c0_63 = arith.constant 0 : index
    %c0_64 = arith.constant 0 : index
    %114 = vector.load %arg13[%c0_63, %c0_64] : memref<1x32xf32, #tpu.memory_space<vmem>>, vector<1x32xf32>
    %cst_65 = arith.constant dense<0.000000e+00> : vector<8xf32>
    %115 = vector.multi_reduction <add>, %112, %cst_65 [1] : vector<8x32xf32> to vector<8xf32>
    %116 = vector.shape_cast %115 : vector<8xf32> to vector<8x1xf32>
    %cst_66 = arith.constant 3.200000e+01 : f32
    %117 = vector.broadcast %cst_66 : f32 to vector<8x1xf32>
    %118 = arith.divf %116, %117 : vector<8x1xf32>
    %119 = vector.broadcast %118 : vector<8x1xf32> to vector<8x32xf32>
    %120 = arith.subf %112, %119 : vector<8x32xf32>
    %121 = arith.mulf %120, %120 : vector<8x32xf32>
    %cst_67 = arith.constant dense<0.000000e+00> : vector<8xf32>
    %122 = vector.multi_reduction <add>, %121, %cst_67 [1] : vector<8x32xf32> to vector<8xf32>
    %123 = vector.shape_cast %122 : vector<8xf32> to vector<8x1xf32>
    %cst_68 = arith.constant 3.200000e+01 : f32
    %124 = vector.broadcast %cst_68 : f32 to vector<8x1xf32>
    %125 = arith.divf %123, %124 : vector<8x1xf32>
    %cst_69 = arith.constant 9.99999974E-6 : f32
    %126 = vector.broadcast %cst_69 : f32 to vector<8x1xf32>
    %127 = arith.addf %125, %126 : vector<8x1xf32>
    %128 = math.rsqrt %127 : vector<8x1xf32>
    %129 = vector.broadcast %118 : vector<8x1xf32> to vector<8x32xf32>
    %130 = arith.subf %112, %129 : vector<8x32xf32>
    %131 = vector.broadcast %128 : vector<8x1xf32> to vector<8x32xf32>
    %132 = arith.mulf %130, %131 : vector<8x32xf32>
    %133 = vector.broadcast %113 : vector<1x32xf32> to vector<8x32xf32>
    %134 = arith.mulf %132, %133 : vector<8x32xf32>
    %135 = vector.broadcast %114 : vector<1x32xf32> to vector<8x32xf32>
    %136 = arith.addf %134, %135 : vector<8x32xf32>
    %137 = arith.truncf %136 : vector<8x32xf32> to vector<8x32xbf16>
    %c0_70 = arith.constant 0 : index
    %c0_71 = arith.constant 0 : index
    %138 = vector.load %arg6[%c0_70, %c0_71] : memref<32x64xbf16, #tpu.memory_space<vmem>>, vector<32x64xbf16>
    %cst_72 = arith.constant dense<0.000000e+00> : vector<8x64xf32>
    %139 = tpu.matmul %137, %138, %cst_72 {dimension_numbers = #tpu.dot_dimension_numbers<[1], [0], [0], [1], [0, 0, 1, 1], [], []>} : vector<8x32xbf16>, vector<32x64xbf16>, vector<8x64xf32> -> vector<8x64xf32>
    %c0_73 = arith.constant 0 : index
    %c0_74 = arith.constant 0 : index
    %140 = vector.load %arg7[%c0_73, %c0_74] : memref<1x64xf32, #tpu.memory_space<vmem>>, vector<1x64xf32>
    %141 = vector.broadcast %140 : vector<1x64xf32> to vector<8x64xf32>
    %142 = arith.addf %139, %141 : vector<8x64xf32>
    %cst_75 = arith.constant 0.000000e+00 : f32
    %143 = vector.broadcast %cst_75 : f32 to vector<8x64xf32>
    %144 = arith.maximumf %142, %143 : vector<8x64xf32>
    %145 = arith.truncf %144 : vector<8x64xf32> to vector<8x64xbf16>
    %c0_76 = arith.constant 0 : index
    %c0_77 = arith.constant 0 : index
    %146 = vector.load %arg8[%c0_76, %c0_77] : memref<64x32xbf16, #tpu.memory_space<vmem>>, vector<64x32xbf16>
    %cst_78 = arith.constant dense<0.000000e+00> : vector<8x32xf32>
    %147 = tpu.matmul %145, %146, %cst_78 {dimension_numbers = #tpu.dot_dimension_numbers<[1], [0], [0], [1], [0, 0, 1, 1], [], []>} : vector<8x64xbf16>, vector<64x32xbf16>, vector<8x32xf32> -> vector<8x32xf32>
    %c0_79 = arith.constant 0 : index
    %c0_80 = arith.constant 0 : index
    %148 = vector.load %arg9[%c0_79, %c0_80] : memref<1x32xf32, #tpu.memory_space<vmem>>, vector<1x32xf32>
    %149 = vector.broadcast %148 : vector<1x32xf32> to vector<8x32xf32>
    %150 = arith.addf %147, %149 : vector<8x32xf32>
    %151 = arith.addf %112, %150 : vector<8x32xf32>
    %c0_81 = arith.constant 0 : index
    %c0_82 = arith.constant 0 : index
    %c0_83 = arith.constant 0 : index
    %152 = vector.load %arg14[%c0_81, %c0_82, %c0_83] : memref<1x8x32xf32, #tpu.memory_space<vmem>>, vector<1x8x32xf32>
    %153 = vector.shape_cast %152 : vector<1x8x32xf32> to vector<8x32xf32>
    %154 = vector.shape_cast %151 : vector<8x32xf32> to vector<1x8x32xf32>
    tpu.vector_store %arg14[%c0_81, %c0_82, %c0_83], %154 {strides = array<i32>} : memref<1x8x32xf32, #tpu.memory_space<vmem>>, vector<1x8x32xf32>,
    return
  }
  func.func @transform_0(%arg0: i32) -> (i32, i32, i32) {
    %c0_i32 = arith.constant 0 : i32
    %c0_i32_0 = arith.constant 0 : i32
    %c0_i32_1 = arith.constant 0 : i32
    return %arg0, %c0_i32, %c0_i32_0 : i32, i32, i32
  }
  func.func @transform_1(%arg0: i32) -> (i32, i32) {
    %c0_i32 = arith.constant 0 : i32
    %c0_i32_0 = arith.constant 0 : i32
    %c0_i32_1 = arith.constant 0 : i32
    return %c0_i32, %c0_i32_0 : i32, i32
  }
  func.func @transform_2(%arg0: i32) -> (i32, i32) {
    %c0_i32 = arith.constant 0 : i32
    %c0_i32_0 = arith.constant 0 : i32
    %c0_i32_1 = arith.constant 0 : i32
    return %c0_i32, %c0_i32_0 : i32, i32
  }
  func.func @transform_3(%arg0: i32) -> (i32, i32) {
    %c0_i32 = arith.constant 0 : i32
    %c0_i32_0 = arith.constant 0 : i32
    %c0_i32_1 = arith.constant 0 : i32
    return %c0_i32, %c0_i32_0 : i32, i32
  }
  func.func @transform_4(%arg0: i32) -> (i32, i32) {
    %c0_i32 = arith.constant 0 : i32
    %c0_i32_0 = arith.constant 0 : i32
    %c0_i32_1 = arith.constant 0 : i32
    return %c0_i32, %c0_i32_0 : i32, i32
  }
  func.func @transform_5(%arg0: i32) -> (i32, i32) {
    %c0_i32 = arith.constant 0 : i32
    %c0_i32_0 = arith.constant 0 : i32
    %c0_i32_1 = arith.constant 0 : i32
    return %c0_i32, %c0_i32_0 : i32, i32
  }
  func.func @transform_6(%arg0: i32) -> (i32, i32) {
    %c0_i32 = arith.constant 0 : i32
    %c0_i32_0 = arith.constant 0 : i32
    %c0_i32_1 = arith.constant 0 : i32
    return %c0_i32, %c0_i32_0 : i32, i32
  }
  func.func @transform_7(%arg0: i32) -> (i32, i32) {
    %c0_i32 = arith.constant 0 : i32
    %c0_i32_0 = arith.constant 0 : i32
    %c0_i32_1 = arith.constant 0 : i32
    return %c0_i32, %c0_i32_0 : i32, i32
  }
  func.func @transform_8(%arg0: i32) -> (i32, i32) {
    %c0_i32 = arith.constant 0 : i32
    %c0_i32_0 = arith.constant 0 : i32
    %c0_i32_1 = arith.constant 0 : i32
    return %c0_i32, %c0_i32_0 : i32, i32
  }
  func.func @transform_9(%arg0: i32) -> (i32, i32) {
    %c0_i32 = arith.constant 0 : i32
    %c0_i32_0 = arith.constant 0 : i32
    %c0_i32_1 = arith.constant 0 : i32
    return %c0_i32, %c0_i32_0 : i32, i32
  }
  func.func @transform_10(%arg0: i32) -> (i32, i32) {
    %c0_i32 = arith.constant 0 : i32
    %c0_i32_0 = arith.constant 0 : i32
    %c0_i32_1 = arith.constant 0 : i32
    return %c0_i32, %c0_i32_0 : i32, i32
  }
  func.func @transform_11(%arg0: i32) -> (i32, i32) {
    %c0_i32 = arith.constant 0 : i32
    %c0_i32_0 = arith.constant 0 : i32
    %c0_i32_1 = arith.constant 0 : i32
    return %c0_i32, %c0_i32_0 : i32, i32
  }
  func.func @transform_12(%arg0: i32) -> (i32, i32) {
    %c0_i32 = arith.constant 0 : i32
    %c0_i32_0 = arith.constant 0 : i32
    %c0_i32_1 = arith.constant 0 : i32
    return %c0_i32, %c0_i32_0 : i32, i32
  }
  func.func @transform_13(%arg0: i32) -> (i32, i32, i32) {
    %c0_i32 = arith.constant 0 : i32
    %c0_i32_0 = arith.constant 0 : i32
    %c0_i32_1 = arith.constant 0 : i32
    return %arg0, %c0_i32, %c0_i32_0 : i32, i32, i32
  }
}

</mosaic_0001>

<bundles_post_ra>
// kernel: tpu_custom_call.1
= control target key start
LH: loop header
LB: loop body
LE: loop exit
PB: predicated region body
PF: predicated region fallthrough
CT: control target
= control target key end

     0   :  { %s1599_s0 = inlined_call_operand.vmem [shape: f32[2,8,32], index: 0, kind: input, shape index: {}]   ;;  %s1600_s1 = inlined_call_operand.vmem [shape: bf16[32,96], index: 1, kind: input, shape index: {}]   ;;  %s1601_s2 = inlined_call_operand.vmem [shape: f32[1,96], index: 2, kind: input, shape index: {}]   ;;  %s1602_s3 = inlined_call_operand.vmem [shape: bf16[32,32], index: 3, kind: input, shape index: {}]   ;;  %s1603_s4 = inlined_call_operand.vmem [shape: f32[1,32], index: 4, kind: input, shape index: {}]   ;;  %s1604_s5 = inlined_call_operand.hbm [shape: bf16[32,64], index: 5, kind: input, shape index: {}]   ;;  %s1605_s6 = inlined_call_operand.vmem [shape: f32[1,64], index: 6, kind: input, shape index: {}]   ;;  %s1606_s7 = inlined_call_operand.vmem [shape: bf16[64,32], index: 7, kind: input, shape index: {}]   ;;  %s1607_s8 = inlined_call_operand.vmem [shape: f32[1,32], index: 8, kind: input, shape index: {}]   ;;  %s1608_s9 = inlined_call_operand.vmem [shape: f32[1,32], index: 9, kind: input, shape index: {}]   ;;  %s1609_s10 = inlined_call_operand.vmem [shape: f32[1,32], index: 10, kind: input, shape index: {}]   ;;  %s1610_s11 = inlined_call_operand.vmem [shape: f32[1,32], index: 11, kind: input, shape index: {}]   ;;  %s1611_s12 = inlined_call_operand.vmem [shape: f32[1,32], index: 12, kind: input, shape index: {}]   ;;  %s1612_s13 = inlined_call_operand.hbm [shape: f32[2,8,32], index: 13, kind: output, shape index: {}]  }
   0x1   :  { %1613 = sst [smem:[#allocation10_spill]] %s1599_s0 }
   0x2   :  { %1614 = sst [smem:[#allocation11_spill]] %s1600_s1 }
   0x3   :  { %1615 = sst [smem:[#allocation12_spill]] %s1601_s2 }
   0x4   :  { %1616 = sst [smem:[#allocation13_spill]] %s1604_s5 }
   0x5   :  { %18 = vsyncpa [#allocation5], 0 }
   0x6   :  { %19 = vsyncpa [#allocation6], 0 }
   0x7   :  { %21 = vsyncpa [#allocation6 + $0x1], 0  ;;  %s1408_s25 = smov 0   ;;  %s1410_s26 = smov 0  }
   0x8   :  { %s1412_s27 = smov 0   ;;  %s1414_s28 = smov 0  }
   0x9 LB: > { %s1429_s29 = sadd.s32 4294967295, %s1318_s28   ;;  %s1051_s30 = sadd.s32 4294967294, %s1318_s28   ;;  %s1318_s28 = sphi %s1414_s28, %s1626_s28   ;;  %s1314_s27 = sphi %s1412_s27, %s1625_s27   ;;  %s1310_s26 = sphi %s1410_s26, %s1624_s26   ;;  %s1306_s25 = sphi %s1408_s25, %s1623_s25  }
   0xa   : > { %s1433_s14 = sadd.s32 1, %s1318_s28   ;;  %s312_s15 = sadd.s32 1, %s1314_s27 }
   0xb   : > { %s309_s16 = ssub.s32 %s1318_s28, %s1433_s14  ;;  %p322_p0 = scmp.ne.s32.totalorder %s1314_s27, %s1310_s26 }
   0xc   : > { %p310_p1 = scmp.eq.s32.totalorder %s309_s16, 0  ;;  %p323_p2 = scmp.eq.s32.totalorder %s1429_s29, 1 }
   0xd   : > { %p328_p3 = scmp.ne.s32.totalorder %s1310_s26, %s1306_s25  ;;  %p329_p4 = scmp.eq.s32.totalorder %s1051_s30, 1 }
   0xe   : > { %s1444_s17 = scalar_select %p310_p1, %s1314_s27, %s312_s15  }
   0xf   : > { %p1446_p5 = por %p323_p2, %p322_p0  ;;  %p1450_p6 = por %p329_p4, %p328_p3 }
  0x10   : > { %p1052_p7 = scmp.ge.s32.totalorder %s1318_s28, 1  ;;  %p336_p8 = scmp.lt.s32.totalorder %s1318_s28, 3 }
  0x11   : > { %p1139_p9 = scmp.eq.s32.totalorder %s1429_s29, 0  ;;  %s1619_s5 = sld [smem:[#allocation13_spill]] }
  0x12   : > { %p337_p10 = pnand %p1052_p7, %p336_p8  ;;  %s1320_s23 = smov [#allocation4]  }
  0x13   : > { %s361_s24 = sshll.u32 %s1320_s23, 4  ;;  %s1321_s30 = smov 64   ;;  %s362_s24 = int_to_ptr.vmem [resolvable:$true] %s361_s24 }
  0x14   : > { %p1131_p11 = pneg %p337_p10  ;;  %s1322_s15 = smov 4  }
  0x15   : > { %405 = sbr.rel (%p337_p10) target bundleno = 1800 (0x708), region = 72 }
  0x16   : > { %p1132_p12 = pnand %p1139_p9, %p1131_p11 }
  0x17   : > { %s359_s22 = sshll.u32 %s1619_s5, 4  ;;  %s360_s22 = int_to_ptr.hbm [resolvable:$true] %s359_s22 }
  0x18   : > { %1134 = dma.hbm_to_vmem [thread:$0]  (!%p1132_p12), %s360_s22, 256, %s362_s24, [#allocation5], %s1321_s30, %s1321_s30, %s1322_s15  }
  0x1a   : > { %1297 = dma.done.wait (%p1139_p9), [#allocation5], 256  }
  0x1b   : > { %1299 = vsyncadd (%p1139_p9), [#allocation5], 4294967040  ;;  %p449_p13 = scmp.lt.s32.totalorder %s1429_s29, 1  ;;  %s1620_s0 = sld [smem:[#allocation10_spill]]  ;;  %vm457_vm0 = vcmask 261120   ;;  %v1323_v2 = vmov 32.0  }
  0x1c   : > { %1200 = vrcp.f32 %v1323_v2  ;;  %s1621_s1 = sld [smem:[#allocation11_spill]]  ;;  %v1192_v25 = vld [vmem:[%s1608_s9] ss:$0 sm:$0xff]  ;;  %vm533_vm5 = vcmask 781312   ;;  %s1324_s22 = smov 104   ;;  %vm576_vm6 = vcmask 1043456  }
  0x1d   : > { %s450_s16 = scalar_select %p449_p13, %s1429_s29, 1  ;;  %v1193_v28 = vld [vmem:[%s1609_s10] ss:$0 sm:$0xff]  ;;  %vm541_vm7 = vcmask 64512   ;;  %vm596_vm8 = vcmask 60416   ;;  %vm663_vm9 = vcmask 126016  }
  0x1e   : > { %s1622_s2 = sld [smem:[#allocation12_spill]]  ;;  %s1325_s24 = smov 120   ;;  %vm730_vm10 = vcmask 191616   ;;  %vm797_vm11 = vcmask 257216   ;;  %vm945_vm15 = vcmask 523264  }
  0x1f   : > { %s1058_s20 = sshll.u32 %s450_s16, 3  ;;  %s1326_s30 = smov 96  }
  0x20   : > { %s1327_s15 = smov 56   ;;  %s1328_s16 = smov 72  }
  0x21   : > { %s452_s5 = scalar_lea.vmem %s1620_s0, %s1058_s20  ;;  %s1329_s20 = smov 88  }
  0x22   : > { %v1471_v0 = vld [vmem:[%s452_s5] sm:$0xff]  ;;  %v1201_v3 = vpop.eup %1200  ;;  %v1116_v14 = vld [vmem:[%s1621_s1 + $0x8] sm:$0xff]  ;;  %s1330_s21 = smov 112   ;;  %s1331_s23 = smov 80  }
  0x23   : > { %v458_v1 = vsel %vm457_vm0, %v1471_v0, 0.0  ;;  %v462_v4 = vmul.f32 32.0, %v1201_v3  ;;  %vm466_vm1 = vweird.f32 %v1201_v3  ;;  %525 = vmatpush.bf16.msra.mxu0 %v1116_v14  ;;  %v1115_v15 = vld [vmem:[%s1621_s1] sm:$0xff]  ;;  %s1332_s5 = smov 64  }
  0x24   : > { %459 = vadd.xlane.f32.xlu0 %v458_v1  ;;  %v1194_v32 = vld [vmem:[%s1622_s2] ss:$0 sm:$0xff] }
  0x25   : > { %v463_v5 = vsub.f32 1.0, %v462_v4 }
  0x27   : > { %v464_v6 = vmul.f32 %v1201_v3, %v463_v5  ;;  %526 = vmatpush.bf16.msra.mxu0 %v1115_v15 }
  0x29   : > { %v465_v7 = vadd.f32 %v1201_v3, %v464_v6 }
  0x2b   : > { %v1475_v8 = vsel %vm466_vm1, %v1201_v3, %v465_v7 }
  0x97   : > { %v460_v9 = vpop.xlane.xlu0 %459 }
  0x98   : > { %v468_v10 = vmul.f32 %v1475_v8, %v460_v9 }
  0x9a   : > { %v469_v11 = vsub.f32 %v1471_v0, %v468_v10 }
  0x9c   : > { %v470_v12 = vmul.f32 %v469_v11, %v469_v11 }
  0x9e   : > { %v471_v13 = vsel %vm457_vm0, %v470_v12, 0.0 }
  0x9f   : > { %472 = vadd.xlane.f32.xlu0 %v471_v13 }
 0x112   : > { %v473_v16 = vpop.xlane.xlu0 %472 }
 0x113   : > { %v474_v17 = vmul.f32 %v473_v16, %v1475_v8 }
 0x115   : > { %v475_v18 = vadd.f32 1e-05, %v474_v17 }
 0x117   : > { %1202 = vrsqrt.f32 %v475_v18  ;;  %vm482_vm3 = vweird.f32 %v475_v18 }
 0x11d   : > { %v1203_v19 = vpop.eup %1202 }
 0x11e   : > { %v477_v20 = vmul.f32 %v1203_v19, %v475_v18  ;;  %vm483_vm2 = vweird.f32 %v1203_v19 }
 0x11f   : > { %vm484_vm4 = vmor %vm482_vm3, %vm483_vm2 }
 0x120   : > { %v478_v21 = vmul.f32 %v1203_v19, %v477_v20 }
 0x122   : > { %v479_v22 = vmul.f32 0.5, %v478_v21 }
 0x124   : > { %v480_v23 = vsub.f32 1.5, %v479_v22 }
 0x126   : > { %v481_v24 = vmul.f32 %v1203_v19, %v480_v23 }
 0x128   : > { %v485_v26 = vsel %vm484_vm4, %v1203_v19, %v481_v24 }
 0x129   : > { %v486_v27 = vmul.f32 %v485_v26, %v469_v11 }
 0x12b   : > { %v490_v29 = vmul.f32 %v1192_v25, %v486_v27 }
 0x12d   : > { %v494_v30 = vadd.f32 %v1193_v28, %v490_v29 }
 0x12f   : > { %v495_v31 = vpack.c.bf16 %v494_v30, %v494_v30 }
 0x131   : > { %1067 = vmatmul.msk.bf16.vlgmr.msra.gmra.mxu0 %vm457_vm0, %v495_v31 }
 0x1ae   : > { %v528_v33 = vpop.f32.mrf.mxu0 }
 0x1af   : > { %v529_v34 = vadd.f32 %v1194_v32, %v528_v33 }
 0x1b1   : > { %v532_v35 = vpack.c.bf16 %v529_v34, %v529_v34 }
 0x1b3   : > { %534 = vst.msk [vmem:[#allocation2] sm:$0xf] %vm533_vm5, %v532_v35 }
 0x1b6   : > { %v530_v36 = vpop.f32.mrf.mxu0 }
 0x1ba   : > { %v732_v37 = vld [vmem:[#allocation2] sm:$0xf] }
 0x1bb   : > { %v598_v38 = vld [vmem:[#allocation2] sm:$0xf]  ;;  %v734_v40 = vunpack.c.l.b16 %v732_v37 }
 0x1bc   : > { %v535_v39 = vld [vmem:[#allocation2] sm:$0xf]  ;;  %v600_v41 = vunpack.c.l.b16 %v598_v38 }
 0x1bd   : > { %v537_v42 = vunpack.c.l.b16 %v535_v39  ;;  %v1497_v43 = vpack.c.b16 %v734_v40, %v734_v40  ;;  %v665_v46 = vld [vmem:[#allocation2] sm:$0xf] }
 0x1be   : > { %v601_v44 = vpack.c.b16 %v600_v41, %v600_v41  ;;  %v667_v47 = vunpack.c.l.b16 %v665_v46 }
 0x1bf   : > { %v538_v45 = vpack.c.b16 %v537_v42, %v537_v42  ;;  %736 = vrot.lane.b32.xlu0 %v1497_v43, %s1324_s22  ;;  %s1333_s22 = smov 40  }
 0x1c0   : > { %602 = vrot.lane.b32.xlu2 %v601_v44, %s1325_s24  ;;  %v668_v48 = vpack.c.b16 %v667_v47, %v667_v47  ;;  %s1334_s24 = smov 48  }
 0x1c1   : > { %539 = vrot.lane.b32.xlu1 %v538_v45, %s1326_s30  ;;  %s1335_s30 = smov 16  }
 0x1c7   : > { %635 = vrot.lane.b32.xlu0 %v601_v44, %s1327_s15  ;;  %s1336_s15 = smov 8  }
 0x1c8   : > { %738 = vrot.lane.b32.xlu2 %v1497_v43, %s1328_s16  ;;  %s1337_s16 = smov 24  }
 0x1c9   : > { %604 = vrot.lane.b32.xlu1 %v601_v44, %s1329_s20 }
 0x1d0   : > { %669 = vrot.lane.b32.xlu2 %v668_v48, %s1330_s21 }
 0x1d1   : > { %671 = vrot.lane.b32.xlu1 %v668_v48, %s1331_s23  ;;  %s446_s23 = sand.u32 1, %s1310_s26  }
 0x1d8   : > { %571 = vrot.lane.b32.xlu2 %v538_v45, %s1332_s5  ;;  %s1057_s5 = sshll.u32 %s446_s23, 3 }
 0x1d9   : > { %s448_s21 = scalar_lea.vmem [#allocation7], %s1057_s5  ;;  %s1272_s5 = scalar_lea.hbm %s1612_s13, 16 }
 0x1da   : > { %s977_s0 = sshll.u32 %s448_s21, 4  ;;  %s978_s0 = int_to_ptr.vmem [resolvable:$true] %s977_s0 }
 0x21a   : > { %v603_v49 = vpop.permute.xlu2 %602 }
 0x222   : > { %v739_v50 = vpop.permute.xlu2 %738 }
 0x223   : > { %v744_v61 = vsel %vm541_vm7, %v739_v50, 0 }
 0x22a   : > { %v670_v51 = vpop.permute.xlu2 %669 }
 0x231   : > { %v737_v52 = vpop.permute.xlu0 %736 }
 0x232   : > { %v572_v53 = vpop.permute.xlu2 %571 }
 0x233   : > { %v540_v54 = vpop.permute.xlu1 %539  ;;  %v578_v55 = vsel %vm576_vm6, %v572_v53, 0 }
 0x234   : > { %v546_v56 = vsel %vm541_vm7, %v540_v54, 0  ;;  %587 = vmatpush.bf16.msra.mxu2 %v578_v55 }
 0x235   : > { %555 = vmatpush.bf16.xpose.msra.mxu1 %v546_v56 }
 0x239   : > { %v636_v57 = vpop.permute.xlu0 %635 }
 0x23a   : > { %v641_v59 = vsel %vm576_vm6, %v636_v57, 0 }
 0x23b   : > { %v605_v58 = vpop.permute.xlu1 %604  ;;  %650 = vmatpush.bf16.msrb.mxu2 %v641_v59 }
 0x23c   : > { %1068 = vmatmul.msk.bf16.vlgmr.msra.gmra.mxu1 %vm541_vm7, %v535_v39  ;;  %v610_v60 = vsel %vm541_vm7, %v605_v58, 0 }
 0x23d   : > { %619 = vmatpush.bf16.xpose.msra.mxu3 %v610_v60 }
 0x243   : > { %v672_v62 = vpop.permute.xlu1 %671 }
 0x244   : > { %1070 = vmatmul.msk.bf16.vlgmr.msra.gmra.mxu3 %vm541_vm7, %v603_v49  ;;  %v677_v63 = vsel %vm541_vm7, %v672_v62, 0 }
 0x245   : > { %753 = vmatpush.bf16.xpose.msrb.mxu3 %v744_v61  ;;  %686 = vmatpush.bf16.xpose.msrb.mxu0 %v677_v63 }
 0x24c   : > { %1072 = vmatmul.msk.bf16.vlgmr.msrb.gmra.mxu0 %vm541_vm7, %v670_v51 }
 0x254   : > { %1074 = vmatmul.msk.bf16.vlgmr.msrb.gmra.mxu3 %vm541_vm7, %v737_v52 }
 0x2b9   : > { %v557_v1 = vpop.f32.mrf.mxu1 }
 0x2ba   : > { %v561_v2 = vsel %vm541_vm7, %v557_v1, -inf }
 0x2bb   : > { %562 = vmax.xlane.f32.xlu1 %v561_v2 }
 0x2c1   : > { %v559_v3 = vpop.f32.mrf.mxu1 }
 0x2c2   : > { %v1118_v3 = vld [vmem:[%s1602_s3 + $0x8] sm:$0xff] }
 0x2c3   : > { %825 = vmatpush.bf16.msra.mxu0 %v1118_v3 }
 0x2c7   : > { %v621_v4 = vpop.f32.mrf.mxu3 }
 0x2c8   : > { %v625_v5 = vsel %vm541_vm7, %v621_v4, -inf }
 0x2c9   : > { %626 = vmax.xlane.f32.xlu2 %v625_v5  ;;  %v688_v6 = vpop.f32.mrf.mxu0 }
 0x2ca   : > { %v692_v7 = vsel %vm541_vm7, %v688_v6, -inf }
 0x2cb   : > { %693 = vmax.xlane.f32.xlu1 %v692_v7 }
 0x2cf   : > { %v623_v9 = vpop.f32.mrf.mxu3 }
 0x2d1   : > { %v690_v10 = vpop.f32.mrf.mxu0 }
 0x2d2   : > { %v1195_v10 = vld [vmem:[%s1603_s4] ss:$0 sm:$0xff] }
 0x2d7   : > { %v755_v11 = vpop.f32.mrf.mxu3 }
 0x2d8   : > { %v759_v12 = vsel %vm541_vm7, %v755_v11, -inf }
 0x2d9   : > { %760 = vmax.xlane.f32.xlu0 %v759_v12 }
 0x2df   : > { %v757_v13 = vpop.f32.mrf.mxu3 }
 0x2e1   : > { %769 = vrot.lane.b32.xlu2 %v1497_v43, %s1333_s22  ;;  %s1112_s22 = sshll.u32 %s1429_s29, 3  ;;  %s965_s29 = scalar_lea.sflag [#allocation6], %s446_s23 }
 0x2e2   : > { %s975_s20 = scalar_lea.hbm %s1612_s13, %s1112_s22 }
 0x2e3   : > { %s979_s1 = sshll.u32 %s975_s20, 4  ;;  %s980_s1 = int_to_ptr.hbm [resolvable:$true] %s979_s1 }
 0x2e4   : > { %702 = vrot.lane.b32.xlu1 %v668_v48, %s1334_s24  ;;  %s1266_s2 = sshra.s32 %s980_s1, 4  ;;  %s1267_s2 = int_to_ptr.hbm [resolvable:$true] %s1266_s2 }
 0x2e5   : > { %s1268_s24 = scalar_lea.hbm %s1267_s2, 8  ;;  %p1273_p3 = scmp.lt.s32.totalorder %s1267_s2, %s1612_s13 }
 0x2e6   : > { %p1269_p0 = scmp.ne.s32.totalorder %s1267_s2, %s1268_s24  ;;  %p1274_p4 = scmp.lt.s32.totalorder %s1272_s5, %s1268_s24 }
 0x2e8   : > { %p1270_p1 = pnand %p1269_p0, %p1446_p5  ;;  %p1275_p7 = por %p1274_p4, %p1273_p3 }
 0x2ea   : > { %p1271_p2 = pneg %p1270_p1 }
 0x2ec   : > { %p1276_p8 = pnand %p1275_p7, %p1271_p2 }
 0x32e   : > { %v563_v14 = vpop.xlane.xlu1 %562 }
 0x32f   : > { %v564_v15 = vsub.f32 %v557_v1, %v563_v14 }
 0x331   : > { %v565_v16 = vmul.f32 1.442695, %v564_v15 }
 0x333   : > { %1204 = vpow2.f32 %v565_v16 }
 0x339   : > { %v1205_v17 = vpop.eup %1204 }
 0x33a   : > { %v567_v18 = vsel %vm541_vm7, %v1205_v17, 0.0  ;;  %v570_v19 = vpack.c.bf16 %v1205_v17, %v1205_v17 }
 0x33b   : > { %568 = vadd.xlane.f32.xlu1 %v567_v18 }
 0x33c   : > { %v627_v20 = vpop.xlane.xlu2 %626  ;;  %1069 = vmatmul.msk.bf16.vlgmr.msra.gmra.mxu2 %vm541_vm7, %v570_v19 }
 0x33d   : > { %v628_v21 = vsub.f32 %v621_v4, %v627_v20  ;;  %v1117_v4 = vld [vmem:[%s1602_s3] sm:$0xff] }
 0x33e   : > { %v694_v22 = vpop.xlane.xlu1 %693  ;;  %826 = vmatpush.bf16.msra.mxu0 %v1117_v4 }
 0x33f   : > { %v629_v23 = vmul.f32 1.442695, %v628_v21  ;;  %v695_v24 = vsub.f32 %v688_v6, %v694_v22  ;;  %v1120_v21 = vld [vmem:[#allocation4 + $0x8] sm:$0xff]  ;;  %v1119_v22 = vld [vmem:[#allocation4] sm:$0xff] }
 0x341   : > { %1206 = vpow2.f32 %v629_v23  ;;  %v696_v25 = vmul.f32 1.442695, %v695_v24 }
 0x343   : > { %1208 = vpow2.f32 %v696_v25  ;;  %v1123_v25 = vld [vmem:[%s1606_s7 + $0x10] sm:$0xff] }
 0x344   : > { %v770_v26 = vpop.permute.xlu2 %769 }
 0x345   : > { %v775_v27 = vsel %vm576_vm6, %v770_v26, 0 }
 0x346   : > { %784 = vmatpush.bf16.msra.mxu2 %v775_v27 }
 0x347   : > { %v1207_v28 = vpop.eup %1206 }
 0x348   : > { %v634_v31 = vpack.c.bf16 %v1207_v28, %v1207_v28  ;;  %v631_v35 = vsel %vm541_vm7, %v1207_v28, 0.0 }
 0x349   : > { %v1209_v29 = vpop.eup %1208 }
 0x34a   : > { %v698_v30 = vsel %vm541_vm7, %v1209_v29, 0.0  ;;  %v701_v40 = vpack.c.bf16 %v1209_v29, %v1209_v29 }
 0x34b   : > { %699 = vadd.xlane.f32.xlu0 %v698_v30 }
 0x34c   : > { %v761_v32 = vpop.xlane.xlu0 %760  ;;  %1071 = vmatmul.msk.bf16.vlgmr.msrb.gmra.mxu2 %vm541_vm7, %v634_v31 }
 0x34d   : > { %v762_v33 = vsub.f32 %v755_v11, %v761_v32 }
 0x34f   : > { %v763_v34 = vmul.f32 1.442695, %v762_v33 }
 0x351   : > { %1210 = vpow2.f32 %v763_v34 }
 0x353   : > { %632 = vadd.xlane.f32.xlu0 %v631_v35  ;;  %v1197_v35 = vld [vmem:[%s1611_s12] ss:$0 sm:$0xff] }
 0x356   : > { %v703_v36 = vpop.permute.xlu1 %702 }
 0x357   : > { %v1211_v37 = vpop.eup %1210  ;;  %v708_v38 = vsel %vm576_vm6, %v703_v36, 0 }
 0x358   : > { %717 = vmatpush.bf16.msrb.mxu1 %v708_v38  ;;  %v765_v39 = vsel %vm541_vm7, %v1211_v37, 0.0  ;;  %v768_v41 = vpack.c.bf16 %v1211_v37, %v1211_v37 }
 0x359   : > { %766 = vadd.xlane.f32.xlu2 %v765_v39  ;;  %v1122_v39 = vld [vmem:[%s1606_s7 + $0x8] sm:$0xff] }
 0x35b   : > { %1073 = vmatmul.msk.bf16.vlgmr.msrb.gmra.mxu1 %vm541_vm7, %v701_v40  ;;  %v1121_v40 = vld [vmem:[%s1606_s7] sm:$0xff] }
 0x35c   : > { %1075 = vmatmul.msk.bf16.vlgmr.msra.gmra.mxu2 %vm541_vm7, %v768_v41  ;;  %900 = vmatpush.bf16.msra.mxu1 %v1120_v21  ;;  %v1198_v41 = vld [vmem:[%s1605_s6] ss:$0 sm:$0xff] }
 0x360   : > { %901 = vmatpush.bf16.msra.mxu1 %v1119_v22 }
 0x3ae   : > { %v569_v42 = vpop.xlane.xlu1 %568 }
 0x3af   : > { %1212 = vrcp.f32 %v569_v42 }
 0x3b5   : > { %v1213_v43 = vpop.eup %1212 }
 0x3be   : > { %v700_v48 = vpop.xlane.xlu0 %699 }
 0x3bf   : > { %v589_v44 = vpop.f32.mrf.mxu2  ;;  %1214 = vrcp.f32 %v700_v48 }
 0x3c0   : > { %v594_v45 = vmul.f32 %v1213_v43, %v589_v44 }
 0x3c2   : > { %v595_v46 = vpack.c.bf16 %v594_v45, %v594_v45 }
 0x3c4   : > { %597 = vst.msk [vmem:[#allocation3] sm:$0xf] %vm596_vm8, %v595_v46 }
 0x3c5   : > { %v1215_v52 = vpop.eup %1214 }
 0x3c6   : > { %v633_v50 = vpop.xlane.xlu0 %632 }
 0x3c7   : > { %v591_v47 = vpop.f32.mrf.mxu2  ;;  %1216 = vrcp.f32 %v633_v50 }
 0x3c8   : > { %v1199_v47 = vld [vmem:[%s1607_s8] ss:$0 sm:$0xff] }
 0x3cc   : > { %v767_v56 = vpop.xlane.xlu2 %766 }
 0x3cd   : > { %v1217_v57 = vpop.eup %1216  ;;  %1218 = vrcp.f32 %v767_v56 }
 0x3cf   : > { %v652_v49 = vpop.f32.mrf.mxu2 }
 0x3d0   : > { %v657_v58 = vmul.f32 %v1217_v57, %v652_v49 }
 0x3d2   : > { %v658_v61 = vpack.c.bf16 %v657_v58, %v657_v58 }
 0x3d3   : > { %v1219_v62 = vpop.eup %1218 }
 0x3d7   : > { %v654_v51 = vpop.f32.mrf.mxu2 }
 0x3d8   : > { %v719_v53 = vpop.f32.mrf.mxu1 }
 0x3d9   : > { %v724_v54 = vmul.f32 %v1215_v52, %v719_v53 }
 0x3db   : > { %v725_v55 = vpack.c.bf16 %v724_v54, %v724_v54 }
 0x3dd   : > { %727 = vrot.lane.b32.xlu0 %v725_v55, %s1335_s30 }
 0x3df   : > { %v786_v59 = vpop.f32.mrf.mxu2 }
 0x3e0   : > { %v721_v60 = vpop.f32.mrf.mxu1  ;;  %v791_v63 = vmul.f32 %v1219_v62, %v786_v59 }
 0x3e2   : > { %v792_v2 = vpack.c.bf16 %v791_v63, %v791_v63 }
 0x3e5   : > { %660 = vrot.lane.b32.xlu0 %v658_v61, %s1336_s15 }
 0x3e7   : > { %v788_v1 = vpop.f32.mrf.mxu2 }
 0x3ed   : > { %794 = vrot.lane.b32.xlu0 %v792_v2, %s1337_s16 }
 0x44f   : > { %v728_v5 = vpop.permute.xlu0 %727 }
 0x457   : > { %v661_v6 = vpop.permute.xlu0 %660 }
 0x458   : > { %664 = vst.msk [vmem:[#allocation3] sm:$0xf] %vm663_vm9, %v661_v6 }
 0x459   : > { %731 = vst.msk [vmem:[#allocation3] sm:$0xf] %vm730_vm10, %v728_v5 }
 0x45f   : > { %v795_v7 = vpop.permute.xlu0 %794 }
 0x460   : > { %798 = vst.msk [vmem:[#allocation3] sm:$0xf] %vm797_vm11, %v795_v7 }
 0x467   : > { %v799_v9 = vld [vmem:[#allocation3] sm:$0xf] }
 0x468   : > { %1084 = vmatmul.msk.bf16.vlgmr.msra.gmra.mxu0 %vm457_vm0, %v799_v9 }
 0x4e5   : > { %v828_v11 = vpop.f32.mrf.mxu0 }
 0x4e6   : > { %v832_v12 = vadd.f32 %v828_v11, %v1471_v0  ;;  %v1124_v0 = vld [vmem:[%s1606_s7 + $0x18] sm:$0xff] }
 0x4e7   : > { %953 = vmatpush.bf16.msra.mxu3 %v1124_v0 }
 0x4e8   : > { %v837_v13 = vadd.f32 %v1195_v10, %v832_v12 }
 0x4ea   : > { %v840_v14 = vsel %vm457_vm0, %v837_v13, 0.0 }
 0x4eb   : > { %841 = vadd.xlane.f32.xlu0 %v840_v14  ;;  %954 = vmatpush.bf16.msra.mxu3 %v1123_v25 }
 0x4ed   : > { %v830_v15 = vpop.f32.mrf.mxu0 }
 0x4ef   : > { %955 = vmatpush.bf16.msra.mxu3 %v1122_v39 }
 0x4f3   : > { %956 = vmatpush.bf16.msra.mxu3 %v1121_v40 }
 0x55e   : > { %v842_v16 = vpop.xlane.xlu0 %841 }
 0x55f   : > { %v843_v17 = vmul.f32 %v842_v16, %v1475_v8 }
 0x561   : > { %v844_v18 = vsub.f32 %v837_v13, %v843_v17 }
 0x563   : > { %v845_v19 = vmul.f32 %v844_v18, %v844_v18 }
 0x565   : > { %v846_v20 = vsel %vm457_vm0, %v845_v19, 0.0 }
 0x566   : > { %847 = vadd.xlane.f32.xlu2 %v846_v20 }
 0x5d9   : > { %v848_v23 = vpop.xlane.xlu2 %847 }
 0x5da   : > { %v849_v24 = vmul.f32 %v848_v23, %v1475_v8  ;;  %v1196_v8 = vld [vmem:[%s1610_s11] ss:$0 sm:$0xff] }
 0x5dc   : > { %v850_v26 = vadd.f32 1e-05, %v849_v24 }
 0x5de   : > { %1220 = vrsqrt.f32 %v850_v26  ;;  %vm857_vm13 = vweird.f32 %v850_v26 }
 0x5e4   : > { %v1221_v27 = vpop.eup %1220 }
 0x5e5   : > { %v852_v28 = vmul.f32 %v1221_v27, %v850_v26  ;;  %vm858_vm12 = vweird.f32 %v1221_v27 }
 0x5e6   : > { %vm859_vm14 = vmor %vm857_vm13, %vm858_vm12 }
 0x5e7   : > { %v853_v29 = vmul.f32 %v1221_v27, %v852_v28 }
 0x5e9   : > { %v854_v30 = vmul.f32 0.5, %v853_v29 }
 0x5eb   : > { %v855_v31 = vsub.f32 1.5, %v854_v30 }
 0x5ed   : > { %v856_v32 = vmul.f32 %v1221_v27, %v855_v31 }
 0x5ef   : > { %v860_v33 = vsel %vm859_vm14, %v1221_v27, %v856_v32 }
 0x5f0   : > { %v861_v34 = vmul.f32 %v860_v33, %v844_v18 }
 0x5f2   : > { %v865_v36 = vmul.f32 %v1196_v8, %v861_v34 }
 0x5f4   : > { %v869_v37 = vadd.f32 %v1197_v35, %v865_v36 }
 0x5f6   : > { %v870_v38 = vpack.c.bf16 %v869_v37, %v869_v37 }
 0x5f8   : > { %1093 = vmatmul.msk.bf16.vlgmr.msra.gmra.mxu1 %vm457_vm0, %v870_v38 }
 0x675   : > { %v903_v42 = vpop.f32.mrf.mxu1 }
 0x676   : > { %v904_v43 = vadd.f32 %v1198_v41, %v903_v42 }
 0x678   : > { %v907_v44 = vmax.f32 %v904_v43, 0.0 }
 0x67a   : > { %v908_v45 = vpack.c.bf16 %v907_v44, %v907_v44 }
 0x67c   : > { %1110 = vmatmul.msk.bf16.vlgmr.msra.gmra.mxu3 %vm945_vm15, %v908_v45 }
 0x67d   : > { %v905_v46 = vpop.f32.mrf.mxu1 }
 0x6ff   : > { %v958_v48 = vpop.f32.mrf.mxu3 }
 0x700   : > { %v959_v49 = vadd.f32 %v1199_v47, %v958_v48 }
 0x702   : > { %v962_v50 = vadd.f32 %v959_v49, %v837_v13 }
 0x704   : > { %963 = vst.msk [vmem:[%s448_s21] sm:$0xff] %vm457_vm0, %v962_v50 }
 0x705   : > { %1279 = shalt.err (!%p1276_p8)
}
 0x706   : > { %1129 = dma.vmem_to_hbm [thread:$0]  (%p1446_p5), %s978_s0, 128, %s980_s1, %s965_s29  }
 0x707   : > { %v960_v51 = vpop.f32.mrf.mxu3 }
 0x708 PF: > { %p1141_p9 = scmp.ge.s32.totalorder %s1318_s28, 2  ;;  %s991_s23 = sand.u32 1, %s1306_s25  }
 0x709   : > { %s992_s20 = scalar_lea.sflag [#allocation6], %s991_s23 }
 0x70a   : > { %p1136_p10 = pnand %p1141_p9, %p1450_p6 }
 0x70c   : > { %p1137_p11 = pneg %p1136_p10 }
 0x70e   : > { %1301 = dma.done.wait (%p1137_p11), %s992_s20, 128  }
 0x70f   : > { %1303 = vsyncadd (%p1137_p11), %s992_s20, 4294967168  ;;  %p24_p12 = scmp.ge.s32.totalorder %s1433_s14, 4   ;;  %s1623_s25 = smov %s1310_s26 }
 0x710   : > { %s1624_s26 = smov %s1314_s27  ;;  %s1625_s27 = smov %s1444_s17 }
 0x711   : > { %s1626_s28 = smov %s1433_s14  ;;  %26 = sbr.rel (!%p24_p12) target bundleno = 9 (0x9), region = 112 }
 0x716   :  { %998 = vsyncpa [#allocation5], 1 }
 0x717   :  { %1000 = vsyncpa [#allocation5 + $0x1], 1 }
 0x718   :  { %1001 = vsyncpa [#allocation6], 1 }
 0x719   :  { %1003 = vsyncpa [#allocation6 + $0x1], 1 }

</bundles_post_ra>
